<compile_context>
chip_gen: v5e
topology: v5e:2x2
jax: 0.10.0
libtpu: 0.0.40
codegen_flags: <defaults>
</compile_context>

<pallas_src>
import jax
import jax.numpy as jnp
from jax.experimental import pallas as pl
from jax.experimental.pallas import tpu as pltpu


def _round_up(x, m):
    return ((x + m - 1) // m) * m


def _painn_update_kernel(s_ref, v_ref,
                         wUV_ref, w1_ref, w2_ref,
                         bUV_ref, b1_ref, b2_ref,
                         s_out_ref, v_out_ref):
    tn, F = s_ref.shape
    mm = wUV_ref.dtype
    f32 = jnp.float32

    s = s_ref[...].astype(f32)                    # (tn, F)
    v = v_ref[...].astype(f32)                    # (3, tn, F)
    v_flat = v.reshape(3 * tn, F)                 # leading-dim merge -> free

    # Fused U/V projection: one MXU contraction, 2F-wide output, f32 accumulate.
    UvVv = jnp.dot(v_flat.astype(mm), wUV_ref[...],
                   preferred_element_type=f32) + bUV_ref[...]       # (3*tn, 2F)
    Uv = UvVv[:, :F]
    Vv = UvVv[:, F:]

    # Vector components as static, sublane-aligned row blocks (tn % 8 == 0).
    Uv0, Uv1, Uv2 = Uv[0 * tn:1 * tn], Uv[1 * tn:2 * tn], Uv[2 * tn:3 * tn]
    Vv0, Vv1, Vv2 = Vv[0 * tn:1 * tn], Vv[1 * tn:2 * tn], Vv[2 * tn:3 * tn]

    Vv_norm = jnp.sqrt(Vv0 * Vv0 + Vv1 * Vv1 + Vv2 * Vv2)           # (tn, F)
    inner = Uv0 * Vv0 + Uv1 * Vv1 + Uv2 * Vv2                       # (tn, F)

    # update_mlp: Linear(2F, F) -> SiLU -> Linear(F, 3F).
    # Single K=2F matmul on the lane-concat of [||Vv||, s].
    x = jnp.concatenate([Vv_norm, s], axis=-1).astype(mm)           # (tn, 2F)
    h = jnp.dot(x, w1_ref[...], preferred_element_type=f32) + b1_ref[...]
    h = h * jax.nn.sigmoid(h)                                       # SiLU (f32 / EUP)

    # Single (F, 3F) matmul; split a_vv/a_sv/a_ss with lane-offset slices.
    a = jnp.dot(h.astype(mm), w2_ref[...], preferred_element_type=f32) + b2_ref[...]
    a_vv, a_sv, a_ss = a[:, :F], a[:, F:2 * F], a[:, 2 * F:]

    s_out_ref[...] = (s + a_sv * inner + a_ss).astype(s_out_ref.dtype)
    v_out_ref[0] = (v[0] + a_vv * Uv0).astype(v_out_ref.dtype)
    v_out_ref[1] = (v[1] + a_vv * Uv1).astype(v_out_ref.dtype)
    v_out_ref[2] = (v[2] + a_vv * Uv2).astype(v_out_ref.dtype)


def painn_update(node_scalar, node_vector, params, *, tile_n=2048,
                 matmul_dtype=jnp.bfloat16, vector_layout="n3f"):
    """PaiNN update (last_layer=False).

    node_scalar: (N, F).
    node_vector: (N, 3, F) if vector_layout == "n3f" (module-native; one
      transpose copy each way), or (3, N, F) if vector_layout == "3nf"
      (zero-copy path — preferred when the producer can keep this layout).
    Returns (new_scalar, new_vector) with new_vector in the same layout as the
    input. Matmuls run with `matmul_dtype` operands and f32 accumulation; pass
    jnp.float32 for exact reference semantics.
    """
    N, F = node_scalar.shape
    if vector_layout == "n3f":
        assert node_vector.shape == (N, 3, F)
        v_in = jnp.transpose(node_vector, (1, 0, 2))   # (3, N, F) — the one copy
    elif vector_layout == "3nf":
        assert node_vector.shape == (3, N, F)
        v_in = node_vector                              # zero-copy
    else:
        raise ValueError("vector_layout must be 'n3f' or '3nf'")

    wU, bU, wV, bV, w1, b1, w2, b2 = params
    md = matmul_dtype
    f32 = jnp.float32

    # ---- one-time wrapper-side weight re-layout (outside the kernel) ----
    wUV = jnp.concatenate([wU, wV], axis=1).astype(md)          # (F, 2F)
    bUV = jnp.concatenate([bU, bV], axis=1).astype(f32)         # (1, 2F)
    w1m = w1.astype(md)                                         # (2F, F)
    b1f = b1.astype(f32)                                        # (1, F)
    w2m = w2.astype(md)                                         # (F, 3F)
    b2f = b2.astype(f32)                                        # (1, 3F)

    # ---- node-dim tiling: big tiles, but >=2 grid steps when possible ------
    tile = min(_round_up(max(tile_n, 8), 8), _round_up(max(-(-N // 2), 1), 8))
    tile = max(8, tile)
    grid = (pl.cdiv(N, tile),)      # partial last block handled by Pallas

    full = lambda i: (0, 0)         # weights/biases: whole array every step

    grid_spec = pltpu.PrefetchScalarGridSpec(
        num_scalar_prefetch=0,
        grid=grid,
        in_specs=[
            pl.BlockSpec((tile, F), lambda i: (i, 0)),           # node_scalar
            pl.BlockSpec((3, tile, F), lambda i: (0, i, 0)),     # node_vector (3,N,F)
            pl.BlockSpec((F, 2 * F), full),                      # W_UV
            pl.BlockSpec((2 * F, F), full),                      # W1
            pl.BlockSpec((F, 3 * F), full),                      # W2
            pl.BlockSpec((1, 2 * F), full),                      # b_UV
            pl.BlockSpec((1, F), full),                          # b1
            pl.BlockSpec((1, 3 * F), full),                      # b2
        ],
        out_specs=[
            pl.BlockSpec((tile, F), lambda i: (i, 0)),           # s_new
            pl.BlockSpec((3, tile, F), lambda i: (0, i, 0)),     # v_new (3,N,F)
        ],
    )

    weights = (wUV, w1m, w2m, bUV, b1f, b2f)
    weight_bytes = sum(int(w.size) * w.dtype.itemsize for w in weights)
    act_bytes = jnp.dtype(node_scalar.dtype).itemsize
    stream_bytes = 8 * tile * F * act_bytes                      # (s+3v) in + (s+3v) out
    vmem_limit = int(min(48 << 20,                               # v7x headroom
                         max(8 << 20, 4 * stream_bytes + 4 * weight_bytes)))

    cost = pl.CostEstimate(
        flops=22 * N * F * F,                # fused UV + merged W1 + merged W2
        transcendentals=2 * N * F,           # sigmoid + sqrt
        bytes_accessed=8 * N * F * act_bytes + weight_bytes,
    )

    s_new, v_new_3nf = pl.pallas_call(
        _painn_update_kernel,
        out_shape=(jax.ShapeDtypeStruct((N, F), node_scalar.dtype),
                   jax.ShapeDtypeStruct((3, N, F), node_vector.dtype)),
        grid_spec=grid_spec,
        compiler_params=pltpu.CompilerParams(
            dimension_semantics=("parallel",),
            vmem_limit_bytes=vmem_limit),
        cost_estimate=cost,
    )(node_scalar, v_in, *weights)

    if vector_layout == "n3f":
        v_new = jnp.transpose(v_new_3nf, (1, 0, 2))              # back to (N, 3, F)
    else:
        v_new = v_new_3nf
    return s_new, v_new


def _reference(node_scalar, node_vector, params, matmul_dtype=jnp.float32):
    """Pure-JAX reference matching the PyTorch forward (last_layer=False).

    node_vector is (N, 3, F). With matmul_dtype=float32 this is the exact
    module semantics; with bfloat16 it mirrors the kernel's precision policy
    (bf16 matmul operands, f32 accumulation, f32 elementwise).
    """
    wU, bU, wV, bV, w1, b1, w2, b2 = params
    N, C, F = node_vector.shape
    md = matmul_dtype

    def mm(x, w):
        return jnp.dot(x.astype(md), w.astype(md),
                       preferred_element_type=jnp.float32)

    v2d = node_vector.reshape(N * C, F)
    Uv = (mm(v2d, wU) + bU).reshape(N, C, F)
    Vv = (mm(v2d, wV) + bV).reshape(N, C, F)
    Vv_norm = jnp.sqrt(jnp.sum(Vv * Vv, axis=1))
    h = mm(Vv_norm, w1[:F]) + mm(node_scalar, w1[F:]) + b1
    h = h * jax.nn.sigmoid(h)
    out = mm(h, w2) + b2
    a_vv, a_sv, a_ss = out[:, :F], out[:, F:2 * F], out[:, 2 * F:]
    delta_v = a_vv[:, None, :] * Uv
    inner = jnp.sum(Uv * Vv, axis=1)
    delta_s = a_sv * inner + a_ss
    return node_scalar + delta_s, node_vector + delta_v


def _init_params(key, node_size):
    """Deterministic synthetic weights (Linear stored in x @ W + b form)."""
    F = node_size
    ks = jax.random.split(key, 8)
    scale = lambda fan_in: 1.0 / jnp.sqrt(fan_in)
    wU = jax.random.normal(ks[0], (F, F), jnp.float32) * scale(F)
    bU = jax.random.normal(ks[1], (1, F), jnp.float32) * 0.01
    wV = jax.random.normal(ks[2], (F, F), jnp.float32) * scale(F)
    bV = jax.random.normal(ks[3], (1, F), jnp.float32) * 0.01
    w1 = jax.random.normal(ks[4], (2 * F, F), jnp.float32) * scale(2 * F)
    b1 = jax.random.normal(ks[5], (1, F), jnp.float32) * 0.01
    w2 = jax.random.normal(ks[6], (F, 3 * F), jnp.float32) * scale(F)
    b2 = jax.random.normal(ks[7], (1, 3 * F), jnp.float32) * 0.01
    return (wU, bU, wV, bV, w1, b1, w2, b2)


if __name__ == "__main__":
    N = 16          # number of nodes
    F = 32          # node_size (feature width)

    key = jax.random.PRNGKey(0)
    k_s, k_v, k_p, k_s2, k_v2 = jax.random.split(key, 5)

    node_scalar = jax.random.normal(k_s, (N, F), jnp.float32)
    node_vector = jax.random.normal(k_v, (N, 3, F), jnp.float32)
    params = _init_params(k_p, F)

    # 1) Default fast path (bf16 matmul operands) vs. precision-matched reference.
    s_bf, v_bf = painn_update(node_scalar, node_vector, params)
    s_bf = jax.block_until_ready(s_bf)
    v_bf = jax.block_until_ready(v_bf)
    s_ref_bf, v_ref_bf = _reference(node_scalar, node_vector, params,
                                    matmul_dtype=jnp.bfloat16)
    assert jnp.allclose(s_bf, s_ref_bf, atol=2e-2, rtol=2e-2)
    assert jnp.allclose(v_bf, v_ref_bf, atol=2e-2, rtol=2e-2)

    # 2) f32 matmul path reproduces the exact module semantics.
    s_f32, v_f32 = painn_update(node_scalar, node_vector, params,
                                matmul_dtype=jnp.float32)
    s_f32 = jax.block_until_ready(s_f32)
    v_f32 = jax.block_until_ready(v_f32)
    s_ref, v_ref = _reference(node_scalar, node_vector, params)
    assert jnp.allclose(s_f32, s_ref, atol=2e-4, rtol=2e-4)
    assert jnp.allclose(v_f32, v_ref, atol=2e-4, rtol=2e-4)

    # 3) Zero-copy component-major layout path ((3, N, F) in and out).
    s_3nf, v_3nf = painn_update(node_scalar,
                                jnp.transpose(node_vector, (1, 0, 2)),
                                params, matmul_dtype=jnp.float32,
                                vector_layout="3nf")
    s_3nf = jax.block_until_ready(s_3nf)
    v_3nf = jax.block_until_ready(v_3nf)
    assert jnp.allclose(s_3nf, s_ref, atol=2e-4, rtol=2e-4)
    assert jnp.allclose(jnp.transpose(v_3nf, (1, 0, 2)), v_ref,
                        atol=2e-4, rtol=2e-4)

    # 4) Ragged node count (exercises the partial-last-block path, no padding).
    N2 = 19
    ns2 = jax.random.normal(k_s2, (N2, F), jnp.float32)
    nv2 = jax.random.normal(k_v2, (N2, 3, F), jnp.float32)
    s2, v2 = painn_update(ns2, nv2, params, matmul_dtype=jnp.float32)
    s2 = jax.block_until_ready(s2)
    v2 = jax.block_until_ready(v2)
    s2_ref, v2_ref = _reference(ns2, nv2, params)
    assert jnp.allclose(s2, s2_ref, atol=2e-4, rtol=2e-4)
    assert jnp.allclose(v2, v2_ref, atol=2e-4, rtol=2e-4)

    print("KERNEL_OK")
</pallas_src>

<mosaic_0001>
module attributes {stable_mosaic.version = 11 : i64} {
  func.func @_painn_update_kernel(%arg0: i32, %arg1: memref<8x32xf32, #tpu.memory_space<vmem>>, %arg2: memref<3x8x32xf32, #tpu.memory_space<vmem>>, %arg3: memref<32x64xbf16, #tpu.memory_space<vmem>>, %arg4: memref<64x32xbf16, #tpu.memory_space<vmem>>, %arg5: memref<32x96xbf16, #tpu.memory_space<vmem>>, %arg6: memref<1x64xf32, #tpu.memory_space<vmem>>, %arg7: memref<1x32xf32, #tpu.memory_space<vmem>>, %arg8: memref<1x96xf32, #tpu.memory_space<vmem>>, %arg9: memref<8x32xf32, #tpu.memory_space<vmem>>, %arg10: memref<3x8x32xf32, #tpu.memory_space<vmem>>) attributes {dimension_semantics = [#tpu.dimension_semantics<parallel>], iteration_bounds = array<i64: 2>, scalar_prefetch = 0 : i64, scratch_operands = 0 : i64, tpu.core_type = #tpu.core_type<tc>, window_params = [{transform_indices = @transform_0, window_bounds = array<i64: 8, 32>}, {transform_indices = @transform_1, window_bounds = array<i64: 3, 8, 32>}, {pipeline_mode = #tpu.pipeline_mode<synchronous>, transform_indices = @transform_2, window_bounds = array<i64: 32, 64>}, {pipeline_mode = #tpu.pipeline_mode<synchronous>, transform_indices = @transform_3, window_bounds = array<i64: 64, 32>}, {pipeline_mode = #tpu.pipeline_mode<synchronous>, transform_indices = @transform_4, window_bounds = array<i64: 32, 96>}, {pipeline_mode = #tpu.pipeline_mode<synchronous>, transform_indices = @transform_5, window_bounds = array<i64: 1, 64>}, {pipeline_mode = #tpu.pipeline_mode<synchronous>, transform_indices = @transform_6, window_bounds = array<i64: 1, 32>}, {pipeline_mode = #tpu.pipeline_mode<synchronous>, transform_indices = @transform_7, window_bounds = array<i64: 1, 96>}, {transform_indices = @transform_8, window_bounds = array<i64: 8, 32>}, {transform_indices = @transform_9, window_bounds = array<i64: 3, 8, 32>}]} {
    %c0 = arith.constant 0 : index
    %c0_0 = arith.constant 0 : index
    %0 = vector.load %arg1[%c0, %c0_0] : memref<8x32xf32, #tpu.memory_space<vmem>>, vector<8x32xf32>
    %c0_1 = arith.constant 0 : index
    %c0_2 = arith.constant 0 : index
    %c0_3 = arith.constant 0 : index
    %1 = vector.load %arg2[%c0_1, %c0_2, %c0_3] : memref<3x8x32xf32, #tpu.memory_space<vmem>>, vector<3x8x32xf32>
    %2 = vector.shape_cast %1 : vector<3x8x32xf32> to vector<24x32xf32>
    %3 = arith.truncf %2 : vector<24x32xf32> to vector<24x32xbf16>
    %c0_4 = arith.constant 0 : index
    %c0_5 = arith.constant 0 : index
    %4 = vector.load %arg3[%c0_4, %c0_5] : memref<32x64xbf16, #tpu.memory_space<vmem>>, vector<32x64xbf16>
    %cst = arith.constant dense<0.000000e+00> : vector<24x64xf32>
    %5 = tpu.matmul %3, %4, %cst {dimension_numbers = #tpu.dot_dimension_numbers<[1], [0], [0], [1], [0, 0, 1, 1], [], []>} : vector<24x32xbf16>, vector<32x64xbf16>, vector<24x64xf32> -> vector<24x64xf32>
    %c0_6 = arith.constant 0 : index
    %c0_7 = arith.constant 0 : index
    %6 = vector.load %arg6[%c0_6, %c0_7] : memref<1x64xf32, #tpu.memory_space<vmem>>, vector<1x64xf32>
    %7 = vector.broadcast %6 : vector<1x64xf32> to vector<24x64xf32>
    %8 = arith.addf %5, %7 : vector<24x64xf32>
    %9 = vector.extract_strided_slice %8 {offsets = [0, 0], sizes = [24, 32], strides = [1, 1]} : vector<24x64xf32> to vector<24x32xf32>
    %10 = vector.extract_strided_slice %8 {offsets = [0, 32], sizes = [24, 32], strides = [1, 1]} : vector<24x64xf32> to vector<24x32xf32>
    %11 = vector.extract_strided_slice %9 {offsets = [0, 0], sizes = [8, 32], strides = [1, 1]} : vector<24x32xf32> to vector<8x32xf32>
    %12 = vector.extract_strided_slice %9 {offsets = [8, 0], sizes = [8, 32], strides = [1, 1]} : vector<24x32xf32> to vector<8x32xf32>
    %13 = vector.extract_strided_slice %9 {offsets = [16, 0], sizes = [8, 32], strides = [1, 1]} : vector<24x32xf32> to vector<8x32xf32>
    %14 = vector.extract_strided_slice %10 {offsets = [0, 0], sizes = [8, 32], strides = [1, 1]} : vector<24x32xf32> to vector<8x32xf32>
    %15 = vector.extract_strided_slice %10 {offsets = [8, 0], sizes = [8, 32], strides = [1, 1]} : vector<24x32xf32> to vector<8x32xf32>
    %16 = vector.extract_strided_slice %10 {offsets = [16, 0], sizes = [8, 32], strides = [1, 1]} : vector<24x32xf32> to vector<8x32xf32>
    %17 = arith.mulf %14, %14 : vector<8x32xf32>
    %18 = arith.mulf %15, %15 : vector<8x32xf32>
    %19 = arith.addf %17, %18 : vector<8x32xf32>
    %20 = arith.mulf %16, %16 : vector<8x32xf32>
    %21 = arith.addf %19, %20 : vector<8x32xf32>
    %22 = math.sqrt %21 : vector<8x32xf32>
    %23 = arith.mulf %11, %14 : vector<8x32xf32>
    %24 = arith.mulf %12, %15 : vector<8x32xf32>
    %25 = arith.addf %23, %24 : vector<8x32xf32>
    %26 = arith.mulf %13, %16 : vector<8x32xf32>
    %27 = arith.addf %25, %26 : vector<8x32xf32>
    %28 = tpu.concatenate %22, %0 in 1 : vector<8x32xf32>, vector<8x32xf32> -> vector<8x64xf32>
    %29 = arith.truncf %28 : vector<8x64xf32> to vector<8x64xbf16>
    %c0_8 = arith.constant 0 : index
    %c0_9 = arith.constant 0 : index
    %30 = vector.load %arg4[%c0_8, %c0_9] : memref<64x32xbf16, #tpu.memory_space<vmem>>, vector<64x32xbf16>
    %cst_10 = arith.constant dense<0.000000e+00> : vector<8x32xf32>
    %31 = tpu.matmul %29, %30, %cst_10 {dimension_numbers = #tpu.dot_dimension_numbers<[1], [0], [0], [1], [0, 0, 1, 1], [], []>} : vector<8x64xbf16>, vector<64x32xbf16>, vector<8x32xf32> -> vector<8x32xf32>
    %c0_11 = arith.constant 0 : index
    %c0_12 = arith.constant 0 : index
    %32 = vector.load %arg7[%c0_11, %c0_12] : memref<1x32xf32, #tpu.memory_space<vmem>>, vector<1x32xf32>
    %33 = vector.broadcast %32 : vector<1x32xf32> to vector<8x32xf32>
    %34 = arith.addf %31, %33 : vector<8x32xf32>
    %35 = arith.negf %34 : vector<8x32xf32>
    %36 = math.exp %35 : vector<8x32xf32>
    %cst_13 = arith.constant 1.000000e+00 : f32
    %37 = vector.broadcast %cst_13 : f32 to vector<8x32xf32>
    %38 = arith.addf %37, %36 : vector<8x32xf32>
    %39 = arith.divf %37, %38 : vector<8x32xf32>
    %40 = arith.mulf %34, %39 : vector<8x32xf32>
    %41 = arith.truncf %40 : vector<8x32xf32> to vector<8x32xbf16>
    %c0_14 = arith.constant 0 : index
    %c0_15 = arith.constant 0 : index
    %42 = vector.load %arg5[%c0_14, %c0_15] : memref<32x96xbf16, #tpu.memory_space<vmem>>, vector<32x96xbf16>
    %cst_16 = arith.constant dense<0.000000e+00> : vector<8x96xf32>
    %43 = tpu.matmul %41, %42, %cst_16 {dimension_numbers = #tpu.dot_dimension_numbers<[1], [0], [0], [1], [0, 0, 1, 1], [], []>} : vector<8x32xbf16>, vector<32x96xbf16>, vector<8x96xf32> -> vector<8x96xf32>
    %c0_17 = arith.constant 0 : index
    %c0_18 = arith.constant 0 : index
    %44 = vector.load %arg8[%c0_17, %c0_18] : memref<1x96xf32, #tpu.memory_space<vmem>>, vector<1x96xf32>
    %45 = vector.broadcast %44 : vector<1x96xf32> to vector<8x96xf32>
    %46 = arith.addf %43, %45 : vector<8x96xf32>
    %47 = vector.extract_strided_slice %46 {offsets = [0, 0], sizes = [8, 32], strides = [1, 1]} : vector<8x96xf32> to vector<8x32xf32>
    %48 = vector.extract_strided_slice %46 {offsets = [0, 32], sizes = [8, 32], strides = [1, 1]} : vector<8x96xf32> to vector<8x32xf32>
    %49 = vector.extract_strided_slice %46 {offsets = [0, 64], sizes = [8, 32], strides = [1, 1]} : vector<8x96xf32> to vector<8x32xf32>
    %50 = arith.mulf %48, %27 : vector<8x32xf32>
    %51 = arith.addf %0, %50 : vector<8x32xf32>
    %52 = arith.addf %51, %49 : vector<8x32xf32>
    %c0_19 = arith.constant 0 : index
    %c0_20 = arith.constant 0 : index
    %53 = vector.load %arg9[%c0_19, %c0_20] : memref<8x32xf32, #tpu.memory_space<vmem>>, vector<8x32xf32>
    tpu.vector_store %arg9[%c0_19, %c0_20], %52 {strides = array<i32>} : memref<8x32xf32, #tpu.memory_space<vmem>>, vector<8x32xf32>,
    %54 = vector.extract_strided_slice %1 {offsets = [0, 0, 0], sizes = [1, 8, 32], strides = [1, 1, 1]} : vector<3x8x32xf32> to vector<1x8x32xf32>
    %55 = vector.shape_cast %54 : vector<1x8x32xf32> to vector<8x32xf32>
    %56 = arith.mulf %47, %11 : vector<8x32xf32>
    %57 = arith.addf %55, %56 : vector<8x32xf32>
    %c0_21 = arith.constant 0 : index
    %c0_22 = arith.constant 0 : index
    %c0_23 = arith.constant 0 : index
    %58 = vector.load %arg10[%c0_21, %c0_22, %c0_23] : memref<3x8x32xf32, #tpu.memory_space<vmem>>, vector<1x8x32xf32>
    %59 = vector.shape_cast %58 : vector<1x8x32xf32> to vector<8x32xf32>
    %60 = vector.shape_cast %57 : vector<8x32xf32> to vector<1x8x32xf32>
    tpu.vector_store %arg10[%c0_21, %c0_22, %c0_23], %60 {strides = array<i32>} : memref<3x8x32xf32, #tpu.memory_space<vmem>>, vector<1x8x32xf32>,
    %61 = vector.extract_strided_slice %1 {offsets = [1, 0, 0], sizes = [1, 8, 32], strides = [1, 1, 1]} : vector<3x8x32xf32> to vector<1x8x32xf32>
    %62 = vector.shape_cast %61 : vector<1x8x32xf32> to vector<8x32xf32>
    %63 = arith.mulf %47, %12 : vector<8x32xf32>
    %64 = arith.addf %62, %63 : vector<8x32xf32>
    %c1 = arith.constant 1 : index
    %c0_24 = arith.constant 0 : index
    %c0_25 = arith.constant 0 : index
    %65 = vector.load %arg10[%c1, %c0_24, %c0_25] : memref<3x8x32xf32, #tpu.memory_space<vmem>>, vector<1x8x32xf32>
    %66 = vector.shape_cast %65 : vector<1x8x32xf32> to vector<8x32xf32>
    %67 = vector.shape_cast %64 : vector<8x32xf32> to vector<1x8x32xf32>
    tpu.vector_store %arg10[%c1, %c0_24, %c0_25], %67 {strides = array<i32>} : memref<3x8x32xf32, #tpu.memory_space<vmem>>, vector<1x8x32xf32>,
    %68 = vector.extract_strided_slice %1 {offsets = [2, 0, 0], sizes = [1, 8, 32], strides = [1, 1, 1]} : vector<3x8x32xf32> to vector<1x8x32xf32>
    %69 = vector.shape_cast %68 : vector<1x8x32xf32> to vector<8x32xf32>
    %70 = arith.mulf %47, %13 : vector<8x32xf32>
    %71 = arith.addf %69, %70 : vector<8x32xf32>
    %c2 = arith.constant 2 : index
    %c0_26 = arith.constant 0 : index
    %c0_27 = arith.constant 0 : index
    %72 = vector.load %arg10[%c2, %c0_26, %c0_27] : memref<3x8x32xf32, #tpu.memory_space<vmem>>, vector<1x8x32xf32>
    %73 = vector.shape_cast %72 : vector<1x8x32xf32> to vector<8x32xf32>
    %74 = vector.shape_cast %71 : vector<8x32xf32> to vector<1x8x32xf32>
    tpu.vector_store %arg10[%c2, %c0_26, %c0_27], %74 {strides = array<i32>} : memref<3x8x32xf32, #tpu.memory_space<vmem>>, vector<1x8x32xf32>,
    return
  }
  func.func @transform_0(%arg0: i32) -> (i32, i32) {
    %c0_i32 = arith.constant 0 : i32
    %c0_i32_0 = arith.constant 0 : i32
    return %arg0, %c0_i32 : i32, i32
  }
  func.func @transform_1(%arg0: i32) -> (i32, i32, i32) {
    %c0_i32 = arith.constant 0 : i32
    %c0_i32_0 = arith.constant 0 : i32
    %c0_i32_1 = arith.constant 0 : i32
    return %c0_i32, %arg0, %c0_i32_0 : i32, i32, i32
  }
  func.func @transform_2(%arg0: i32) -> (i32, i32) {
    %c0_i32 = arith.constant 0 : i32
    %c0_i32_0 = arith.constant 0 : i32
    %c0_i32_1 = arith.constant 0 : i32
    return %c0_i32, %c0_i32_0 : i32, i32
  }
  func.func @transform_3(%arg0: i32) -> (i32, i32) {
    %c0_i32 = arith.constant 0 : i32
    %c0_i32_0 = arith.constant 0 : i32
    %c0_i32_1 = arith.constant 0 : i32
    return %c0_i32, %c0_i32_0 : i32, i32
  }
  func.func @transform_4(%arg0: i32) -> (i32, i32) {
    %c0_i32 = arith.constant 0 : i32
    %c0_i32_0 = arith.constant 0 : i32
    %c0_i32_1 = arith.constant 0 : i32
    return %c0_i32, %c0_i32_0 : i32, i32
  }
  func.func @transform_5(%arg0: i32) -> (i32, i32) {
    %c0_i32 = arith.constant 0 : i32
    %c0_i32_0 = arith.constant 0 : i32
    %c0_i32_1 = arith.constant 0 : i32
    return %c0_i32, %c0_i32_0 : i32, i32
  }
  func.func @transform_6(%arg0: i32) -> (i32, i32) {
    %c0_i32 = arith.constant 0 : i32
    %c0_i32_0 = arith.constant 0 : i32
    %c0_i32_1 = arith.constant 0 : i32
    return %c0_i32, %c0_i32_0 : i32, i32
  }
  func.func @transform_7(%arg0: i32) -> (i32, i32) {
    %c0_i32 = arith.constant 0 : i32
    %c0_i32_0 = arith.constant 0 : i32
    %c0_i32_1 = arith.constant 0 : i32
    return %c0_i32, %c0_i32_0 : i32, i32
  }
  func.func @transform_8(%arg0: i32) -> (i32, i32) {
    %c0_i32 = arith.constant 0 : i32
    %c0_i32_0 = arith.constant 0 : i32
    return %arg0, %c0_i32 : i32, i32
  }
  func.func @transform_9(%arg0: i32) -> (i32, i32, i32) {
    %c0_i32 = arith.constant 0 : i32
    %c0_i32_0 = arith.constant 0 : i32
    %c0_i32_1 = arith.constant 0 : i32
    return %c0_i32, %arg0, %c0_i32_0 : i32, i32, i32
  }
}

</mosaic_0001>

<bundles_post_ra>
// kernel: tpu_custom_call.1
= control target key start
LH: loop header
LB: loop body
LE: loop exit
PB: predicated region body
PF: predicated region fallthrough
CT: control target
= control target key end

     0   :  { %s1524_s0 = inlined_call_operand.hbm [shape: f32[16,32], index: 0, kind: input, shape index: {}]   ;;  %s1525_s1 = inlined_call_operand.vmem [shape: f32[3,16,32], index: 1, kind: input, shape index: {}]   ;;  %s1526_s2 = inlined_call_operand.hbm [shape: bf16[32,64], index: 2, kind: input, shape index: {}]   ;;  %s1527_s3 = inlined_call_operand.vmem [shape: bf16[64,32], index: 3, kind: input, shape index: {}]   ;;  %s1528_s4 = inlined_call_operand.hbm [shape: bf16[32,96], index: 4, kind: input, shape index: {}]   ;;  %s1529_s5 = inlined_call_operand.vmem [shape: f32[1,64], index: 5, kind: input, shape index: {}]   ;;  %s1530_s6 = inlined_call_operand.vmem [shape: f32[1,32], index: 6, kind: input, shape index: {}]   ;;  %s1531_s7 = inlined_call_operand.vmem [shape: f32[1,96], index: 7, kind: input, shape index: {}]   ;;  %s1532_s8 = inlined_call_operand.hbm [shape: f32[16,32], index: 8, kind: output, shape index: {0}]   ;;  %s1533_s9 = inlined_call_operand.hbm [shape: f32[3,16,32], index: 9, kind: output, shape index: {1}]  }
   0x1   :  { %1539 = sst [smem:[#allocation21_spill]] %s1526_s2 }
   0x2   :  { %1540 = sst [smem:[#allocation22_spill]] %s1528_s4 }
   0x3   :  { %15 = vsyncpa [#allocation3], 0 }
   0x4   :  { %17 = vsyncpa [#allocation3 + $0x1], 0 }
   0x5   :  { %18 = vsyncpa [#allocation7], 0 }
   0x6   :  { %19 = vsyncpa [#allocation4], 0 }
   0x7   :  { %21 = vsyncpa [#allocation4 + $0x1], 0 }
   0x8   :  { %22 = vsyncpa [#allocation11], 0 }
   0x9   :  { %24 = vsyncpa [#allocation11 + $0x1], 0  ;;  %s1272_s30 = smov 0   ;;  %s1274_s10 = smov 0  }
   0xa   :  { %s1276_s11 = smov 0   ;;  %s1278_s12 = smov 0  }
   0xb LB: > { %1541 = sst [smem:[#allocation16_spill]] %s1206_s11  ;;  %s1293_s13 = sadd.s32 4294967295, %s1210_s12   ;;  %s1210_s12 = sphi %s1278_s12, %s1555_s12   ;;  %s1206_s11 = sphi %s1276_s11, %s1557_s11   ;;  %s1202_s10 = sphi %s1274_s10, %s1559_s10   ;;  %s1198_s30 = sphi %s1272_s30, %s1558_s30  }
   0xc   : > { %1542 = sst [smem:[#allocation17_spill]] %s1210_s12  ;;  %s867_s14 = sadd.s32 4294967294, %s1210_s12  }
   0xd   : > { %s1297_s15 = sadd.s32 1, %s1210_s12   ;;  %s37_s16 = sadd.s32 1, %s1206_s11 }
   0xe   : > { %1543 = sst [smem:[#allocation18_spill]] %s1297_s15  ;;  %s34_s17 = ssub.s32 %s1210_s12, %s1297_s15 }
   0xf   : > { %p44_p0 = scmp.ne.s32.totalorder %s1206_s11, %s1202_s10  ;;  %p35_p1 = scmp.eq.s32.totalorder %s34_s17, 0 }
  0x10   : > { %p45_p2 = scmp.eq.s32.totalorder %s1210_s12, 0  ;;  %p50_p3 = scmp.ne.s32.totalorder %s1202_s10, %s1198_s30 }
  0x11   : > { %p51_p4 = scmp.eq.s32.totalorder %s1293_s13, 0  ;;  %p226_p7 = scmp.eq.s32.totalorder %s1293_s13, 1 }
  0x12   : > { %s1309_s18 = scalar_select %p35_p1, %s1206_s11, %s37_s16  }
  0x13   : > { %p1311_p5 = por %p45_p2, %p44_p0  ;;  %p1317_p6 = por %p51_p4, %p50_p3 }
  0x14   : > { %1544 = sst [smem:[#allocation19_spill]] %s1309_s18  ;;  %p232_p8 = scmp.eq.s32.totalorder %s867_s14, 1 }
  0x15   : > { %p868_p9 = scmp.ge.s32.totalorder %s1210_s12, 1  ;;  %p265_p10 = scmp.lt.s32.totalorder %s1210_s12, 3 }
  0x16   : > { %p1324_p11 = por %p226_p7, %p44_p0  ;;  %p1328_p12 = por %p232_p8, %p50_p3 }
  0x17   : > { %p1332_p13 = pnand %p868_p9, %p265_p10  ;;  %s1551_s2 = sld [smem:[#allocation21_spill]] }
  0x18   : > { %s1548_s22 = scalar_select %p1328_p12, 1, 0 }
  0x19   : > { %p950_p1 = pneg %p1332_p13  ;;  %s1212_s27 = smov [#allocation6]  }
  0x1a   : > { %1549 = sst [smem:[#allocation20_spill]] %s1548_s22  ;;  %s278_s28 = sshll.u32 %s1212_s27, 4  ;;  %s279_s28 = int_to_ptr.vmem [resolvable:$true] %s278_s28 }
  0x1b   : > { %p951_p0 = pnand %p950_p1, %p51_p4  ;;  %s1552_s4 = sld [smem:[#allocation22_spill]] }
  0x1c   : > { %s1213_s17 = smov 64   ;;  %s1214_s18 = smov 4  }
  0x1d   : > { %s276_s26 = sshll.u32 %s1551_s2, 4  ;;  %s1215_s15 = smov [#allocation8]   ;;  %s277_s26 = int_to_ptr.hbm [resolvable:$true] %s276_s26 }
  0x1e   : > { %953 = dma.hbm_to_vmem [thread:$0]  (!%p951_p0), %s277_s26, 256, %s279_s28, [#allocation7], %s1213_s17, %s1213_s17, %s1214_s18  }
  0x1f   : > { %s295_s24 = sshll.u32 %s1215_s15, 4  ;;  %p871_p2 = scmp.ge.s32.totalorder %s1210_s12, 2  ;;  %s296_s24 = int_to_ptr.vmem [resolvable:$true] %s295_s24 }
  0x20   : > { %s1350_s25 = sand.u32 (!%p871_p2), 1, %s1206_s11   ;;  %s873_s27 = sshll.u32 (!%p871_p2), %s1210_s12, 3 }
  0x21   : > { %s293_s16 = sshll.u32 %s1552_s4, 4  ;;  %314 = sbr.rel (%p871_p2) target bundleno = 57 (0x39), region = 40  ;;  %s294_s16 = int_to_ptr.hbm [resolvable:$true] %s293_s16 }
  0x22   : > { %956 = dma.hbm_to_vmem [thread:$0]  (!%p951_p0), %s294_s16, 256, %s296_s24, [#allocation7], %s1213_s17, %s1213_s17, %s1214_s18  }
  0x23   : > { %s872_s29 = sshll.u32 (!%p871_p2), %s1350_s25, 3  ;;  %s326_s15 = scalar_lea.hbm (!%p871_p2), %s1524_s0, %s873_s27 }
  0x24   : > { %s328_s14 = sshll.u32 (!%p871_p2), %s326_s15, 4  ;;  %s322_s18 = scalar_lea.vmem (!%p871_p2), [#allocation2], %s872_s29  ;;  %s329_s14 = int_to_ptr.hbm [resolvable:$true] %s328_s14 }
  0x25   : > { %s330_s16 = sshll.u32 (!%p871_p2), %s322_s18, 4  ;;  %s319_s17 = scalar_lea.sflag (!%p871_p2), [#allocation3], %s1350_s25  ;;  %s331_s16 = int_to_ptr.vmem [resolvable:$true] %s330_s16 }
  0x26   : > { %s1080_s24 = sshra.s32 %s329_s14, 4  ;;  %s1086_s12 = scalar_lea.hbm %s1524_s0, 16  ;;  %s1081_s24 = int_to_ptr.hbm [resolvable:$true] %s1080_s24 }
  0x27   : > { %s1082_s2 = scalar_lea.hbm %s1081_s24, 8  ;;  %p1087_p9 = scmp.lt.s32.totalorder %s1081_s24, %s1524_s0 }
  0x28   : > { %p1083_p3 = scmp.ne.s32.totalorder %s1081_s24, %s1082_s2  ;;  %p1088_p10 = scmp.lt.s32.totalorder %s1086_s12, %s1082_s2 }
  0x2a   : > { %p1084_p7 = pnand %p1083_p3, %p1311_p5  ;;  %p1089_p1 = por %p1088_p10, %p1087_p9 }
  0x2c   : > { %p1085_p8 = pneg %p1084_p7 }
  0x2e   : > { %p1090_p0 = pnand %p1089_p1, %p1085_p8 }
  0x30   : > { %1093 = shalt.err (!%p1090_p0)
}
  0x31   : > { %940 = dma.hbm_to_vmem [thread:$0]  (%p1311_p5), %s329_s14, 128, %s331_s16, %s319_s17  }
  0x32   : > { %336 = sbr.rel (!%p1311_p5) target bundleno = 57 (0x39), region = 48  ;;  %s342_s4 = scalar_lea.vmem (%p1311_p5), %s1525_s1, %s873_s27 }
  0x33   : > { %s934_s29 = smul.u32 (%p1311_p5), 24, %s1350_s25  ;;  %v375_v0 = vld [vmem:[%s342_s4] sm:$0xff] (%p1311_p5)  ;;  %v377_v1 = vld [vmem:[%s342_s4 + $0x10] sm:$0xff] (%p1311_p5) }
  0x34   : > { %v379_v2 = vld [vmem:[%s342_s4 + $0x20] sm:$0xff] (%p1311_p5) }
  0x35   : > { %s340_s11 = scalar_lea.vmem (%p1311_p5), [#allocation5], %s934_s29 }
  0x36   : > { %376 = vst [vmem:[%s340_s11] sm:$0xff] (%p1311_p5), %v375_v0 }
  0x37   : > { %378 = vst [vmem:[%s340_s11 + $0x8] sm:$0xff] %v377_v1 }
  0x38   : > { %380 = vst [vmem:[%s340_s11 + $0x10] sm:$0xff] %v379_v2 }
  0x39 PF: > { %389 = sbr.rel (%p1332_p13) target bundleno = 782 (0x30e), region = 86  ;;  %s1377_s2 = sand.u32 (!%p1332_p13), 1, %s1202_s10  }
  0x3a   : > { %s876_s12 = sshll.u32 (!%p1332_p13), %s1377_s2, 3  ;;  %s392_s19 = scalar_lea.sflag (!%p1332_p13), [#allocation3], %s1377_s2 }
  0x3b   : > { %s1383_s22 = scalar_lea.vmem (!%p1332_p13), [#allocation2], %s876_s12 }
  0x3e   : > { %1181 = dma.done.wait (%p1317_p6), %s392_s19, 128  }
  0x3f   : > { %1183 = vsyncadd (%p1317_p6), %s392_s19, 4294967168  ;;  %s935_s23 = smul.u32 24, %s1377_s2 }
  0x41   : > { %s404_s25 = scalar_lea.vmem [#allocation5], %s935_s23 }
  0x42   : > { %1185 = dma.done.wait (%p51_p4), [#allocation7], 512  }
  0x43   : > { %1187 = vsyncadd (%p51_p4), [#allocation7], 4294966784  ;;  %v925_v3 = vld [vmem:[#allocation6 + $0x8] sm:$0xff]  ;;  %v924_v4 = vld [vmem:[#allocation6] sm:$0xff]  ;;  %vm484_vm0 = vcmask 261120   ;;  %s1216_s14 = smov 96  }
  0x44   : > { %v1396_v5 = vld [vmem:[%s404_s25] sm:$0xff]  ;;  %v1398_v6 = vld [vmem:[%s404_s25 + $0x8] sm:$0xff]  ;;  %497 = vmatpush.bf16.msra.mxu0 %v925_v3  ;;  %932 = vmatpush.bf16.msra.mxu3 %v925_v3  ;;  %v1400_v7 = vld [vmem:[%s404_s25 + $0x10] sm:$0xff]  ;;  %s1217_s18 = smov 32   ;;  %vm589_vm3 = vcmask 523264   ;;  %s1218_s24 = smov 64  }
  0x45   : > { %v462_v8 = vpack.c.bf16 %v1398_v6, %v1396_v5  ;;  %v463_v9 = vpack.c.bf16 %v1400_v7, %v1400_v7  ;;  %v1011_v10 = vld [vmem:[%s1529_s5] ss:$0 sm:$0xff]  ;;  %v929_v34 = vld [vmem:[%s1527_s3 + $0x18] sm:$0xff]  ;;  %v928_v36 = vld [vmem:[%s1527_s3 + $0x10] sm:$0xff]  ;;  %s456_s26 = scalar_lea.vmem [#allocation10], %s935_s23  ;;  %s696_s23 = scalar_lea.sflag [#allocation11], %s1377_s2 }
  0x46   : > { %v1431_v33 = vld [vmem:[%s1383_s22] sm:$0xff]  ;;  %597 = vmatpush.bf16.msra.mxu1 %v929_v34  ;;  %v931_v50 = vld [vmem:[#allocation8 + $0x8] sm:$0xff]  ;;  %v930_v52 = vld [vmem:[#allocation8] sm:$0xff]  ;;  %s920_s22 = sshll.u32 %s1293_s13, 3  ;;  %s721_s29 = sshll.u32 %s456_s26, 4  ;;  %s722_s29 = int_to_ptr.vmem [resolvable:$true] %s721_s29 }
  0x47   : > { %v927_v37 = vld [vmem:[%s1527_s3 + $0x8] sm:$0xff]  ;;  %v926_v42 = vld [vmem:[%s1527_s3] sm:$0xff]  ;;  %656 = vmatpush.bf16.msra.mxu2 %v931_v50  ;;  %s720_s16 = scalar_lea.hbm %s1533_s9, %s920_s22 }
  0x48   : > { %498 = vmatpush.bf16.msra.mxu0 %v924_v4  ;;  %933 = vmatpush.bf16.msra.mxu3 %v924_v4  ;;  %v1012_v51 = vld [vmem:[%s1530_s6] ss:$0 sm:$0xff]  ;;  %s723_s17 = sshll.u32 %s720_s16, 4  ;;  %s724_s17 = int_to_ptr.hbm [resolvable:$true] %s723_s17 }
  0x49   : > { %s1122_s28 = sshra.s32 %s724_s17, 4  ;;  %s1123_s28 = int_to_ptr.hbm [resolvable:$true] %s1122_s28 }
  0x4a   : > { %598 = vmatpush.bf16.msra.mxu1 %v928_v36  ;;  %s1124_s15 = scalar_lea.hbm %s1123_s28, 24  ;;  %p1129_p13 = scmp.lt.s32.totalorder %s1123_s28, %s1533_s9 }
  0x4b   : > { %888 = vmatmul.msk.bf16.vlgmr.msra.gmra.mxu0 %vm484_vm0, %v462_v8  ;;  %889 = vmatmul.msk.bf16.vlgmr.msra.gmra.mxu3 %vm484_vm0, %v463_v9  ;;  %p1125_p4 = scmp.ne.s32.totalorder %s1123_s28, %s1124_s15 }
  0x4c   : > { %657 = vmatpush.bf16.msra.mxu2 %v930_v52 }
  0x4d   : > { %p1126_p5 = pnand %p1125_p4, %p1324_p11 }
  0x4e   : > { %599 = vmatpush.bf16.msra.mxu1 %v927_v37 }
  0x4f   : > { %p1127_p6 = pneg %p1126_p5 }
  0x52   : > { %600 = vmatpush.bf16.msra.mxu1 %v926_v42 }
  0xc8   : > { %v500_v11 = vpop.f32.mrf.mxu0 }
  0xc9   : > { %v1411_v12 = vadd.f32 %v1011_v10, %v500_v11 }
  0xcb   : > { %527 = vrot.lane.b32.xlu1 %v1411_v12, %s1216_s14  ;;  %v509_v17 = vmul.f32 %v1411_v12, %v1411_v12 }
  0xce   : > { %v505_v13 = vpop.f32.mrf.mxu3 }
  0xcf   : > { %v1415_v14 = vadd.f32 %v1011_v10, %v505_v13 }
  0xd0   : > { %v502_v15 = vpop.f32.mrf.mxu0 }
  0xd1   : > { %v1417_v16 = vadd.f32 %v1011_v10, %v502_v15  ;;  %538 = vrot.lane.b32.xlu2 %v1415_v14, %s1216_s14  ;;  %v512_v18 = vmul.f32 %v1415_v14, %v1415_v14  ;;  %v1013_v10 = vld [vmem:[%s1531_s7] ss:$0 sm:$0xff] }
  0xd3   : > { %v510_v19 = vmul.f32 %v1417_v16, %v1417_v16  ;;  %532 = vrot.lane.b32.xlu1 %v1417_v16, %s1216_s14 }
  0xd5   : > { %v511_v20 = vadd.f32 %v510_v19, %v509_v17 }
  0xd6   : > { %v507_v21 = vpop.f32.mrf.mxu3 }
  0xd7   : > { %v513_v22 = vadd.f32 %v512_v18, %v511_v20 }
  0xd9   : > { %1014 = vrsqrt.f32 %v513_v22  ;;  %vm521_vm1 = vcmp.eq.f32.partialorder %v513_v22, inf  ;;  %v524_v30 = vand.u32 2147483648, %v513_v22  ;;  %vm523_vm2 = vcmp.eq.f32.partialorder %v513_v22, 0.0 }
  0xdf   : > { %v1015_v23 = vpop.eup %1014 }
  0xe0   : > { %v515_v24 = vmul.f32 %v1015_v23, %v513_v22 }
  0xe2   : > { %v516_v25 = vmul.f32 %v1015_v23, %v515_v24 }
  0xe4   : > { %v517_v26 = vmul.f32 0.5, %v516_v25 }
  0xe6   : > { %v518_v27 = vsub.f32 1.5, %v517_v26 }
  0xe8   : > { %v519_v28 = vmul.f32 %v1015_v23, %v518_v27 }
  0xea   : > { %v520_v29 = vmul.f32 %v519_v28, %v513_v22 }
  0xec   : > { %v522_v31 = vsel %vm521_vm1, %v513_v22, %v520_v29 }
  0xed   : > { %v525_v32 = vsel %vm523_vm2, %v524_v30, %v522_v31 }
  0xee   : > { %544 = vrot.lane.b32.xlu0 %v525_v32, %s1216_s14 }
  0xf6   : > { %548 = vrot.lane.b32.xlu0 %v1431_v33, %s1217_s18 }
 0x12b   : > { %v539_v38 = vpop.permute.xlu2 %538 }
 0x12c   : > { %v541_v43 = vmul.f32 %v539_v38, %v1415_v14 }
 0x13d   : > { %v528_v35 = vpop.permute.xlu1 %527 }
 0x13e   : > { %v530_v40 = vmul.f32 %v528_v35, %v1411_v12 }
 0x145   : > { %v533_v39 = vpop.permute.xlu1 %532 }
 0x146   : > { %v535_v41 = vmul.f32 %v533_v39, %v1417_v16 }
 0x148   : > { %v536_v44 = vadd.f32 %v535_v41, %v530_v40 }
 0x14a   : > { %v542_v45 = vadd.f32 %v541_v43, %v536_v44 }
 0x14c   : > { %664 = vrot.lane.b32.xlu2 %v542_v45, %s1217_s18 }
 0x160   : > { %v545_v46 = vpop.permute.xlu0 %544 }
 0x168   : > { %v549_v47 = vpop.permute.xlu0 %548 }
 0x169   : > { %v551_v48 = vsel %vm484_vm0, %v545_v46, %v549_v47 }
 0x16a   : > { %v552_v49 = vpack.c.bf16 %v551_v48, %v551_v48 }
 0x16c   : > { %906 = vmatmul.msk.bf16.vlgmr.msra.gmra.mxu1 %vm589_vm3, %v552_v49 }
 0x1a6   : > { %v665_v15 = vpop.permute.xlu2 %664 }
 0x1e9   : > { %v602_v53 = vpop.f32.mrf.mxu1 }
 0x1ea   : > { %v603_v54 = vadd.f32 %v1012_v51, %v602_v53 }
 0x1ec   : > { %v907_v55 = vmul.f32 -1.442695, %v603_v54 }
 0x1ee   : > { %1016 = vpow2.f32 %v907_v55 }
 0x1f1   : > { %v604_v56 = vpop.f32.mrf.mxu1 }
 0x1f4   : > { %v1017_v57 = vpop.eup %1016 }
 0x1f5   : > { %v609_v58 = vadd.f32 1.0, %v1017_v57 }
 0x1f7   : > { %1018 = vrcp.f32 %v609_v58  ;;  %v621_v62 = vand.u32 2147483648, %v609_v58  ;;  %v619_v0 = vand.u32 2147483647, %v609_v58  ;;  %vm615_vm5 = vweird.f32 %v609_v58 }
 0x1f9   : > { %v622_v2 = vor.u32 1.1754944e-38, %v621_v62  ;;  %vm620_vm7 = vcmp.eq.f32.partialorder %v619_v0, 8.507059e+37 }
 0x1fd   : > { %v1019_v59 = vpop.eup %1018 }
 0x1fe   : > { %v611_v60 = vmul.f32 %v1019_v59, %v609_v58  ;;  %vm616_vm4 = vweird.f32 %v1019_v59 }
 0x1ff   : > { %vm617_vm6 = vmor %vm615_vm5, %vm616_vm4 }
 0x200   : > { %v612_v61 = vsub.f32 1.0, %v611_v60 }
 0x202   : > { %v613_v63 = vmul.f32 %v1019_v59, %v612_v61 }
 0x204   : > { %v614_v1 = vadd.f32 %v1019_v59, %v613_v63 }
 0x206   : > { %v618_v3 = vsel %vm617_vm6, %v1019_v59, %v614_v1 }
 0x207   : > { %v623_v4 = vsel %vm620_vm7, %v622_v2, %v618_v3 }
 0x208   : > { %v625_v8 = vmul.f32 %v623_v4, %v603_v54 }
 0x20a   : > { %v626_v9 = vpack.c.bf16 %v625_v8, %v625_v8 }
 0x20c   : > { %916 = vmatmul.msk.bf16.vlgmr.msra.gmra.mxu2 %vm484_vm0, %v626_v9 }
 0x28f   : > { %v659_v11 = vpop.f32.mrf.mxu2 }
 0x290   : > { %v660_v13 = vadd.f32 %v1013_v10, %v659_v11 }
 0x292   : > { %v679_v17 = vmul.f32 %v660_v13, %v1411_v12  ;;  %v682_v18 = vmul.f32 %v660_v13, %v1417_v16  ;;  %v686_v19 = vmul.f32 %v660_v13, %v1415_v14  ;;  %674 = vrot.lane.b32.xlu1 %v660_v13, %s1218_s24  ;;  %v667_v20 = vmul.f32 %v665_v15, %v660_v13 }
 0x294   : > { %v680_v21 = vadd.f32 %v679_v17, %v1396_v5  ;;  %v683_v22 = vadd.f32 %v682_v18, %v1398_v6  ;;  %v687_v23 = vadd.f32 %v686_v19, %v1400_v7  ;;  %669 = vrot.lane.b32.xlu0 %v667_v20, %s1216_s14  ;;  %s1128_s14 = scalar_lea.hbm %s1533_s9, 48 }
 0x295   : > { %p1130_p3 = scmp.lt.s32.totalorder %s1128_s14, %s1124_s15 }
 0x296   : > { %681 = vst.msk [vmem:[%s456_s26] sm:$0xff] %vm484_vm0, %v680_v21 }
 0x297   : > { %917 = vst.msk [vmem:[%s456_s26 + $0x8] sm:$0xff] %vm484_vm0, %v683_v22  ;;  %v661_v12 = vpop.f32.mrf.mxu2  ;;  %p1131_p7 = por %p1130_p3, %p1129_p13 }
 0x298   : > { %918 = vst.msk [vmem:[%s456_s26 + $0x10] sm:$0xff] %vm484_vm0, %v687_v23 }
 0x299   : > { %p1132_p8 = pnand %p1131_p7, %p1127_p6 }
 0x29b   : > { %1135 = shalt.err (!%p1132_p8)
}
 0x29c   : > { %s1219_s20 = smov 128   ;;  %s1220_s27 = smov 256  }
 0x29d   : > { %s1221_s18 = smov 8   ;;  %s706_s26 = scalar_lea.hbm %s1532_s8, %s920_s22 }
 0x29e   : > { %947 = dma.vmem_to_hbm [thread:$0]  (%p1324_p11), %s722_s29, 384, %s724_s17, %s696_s23, %s1219_s20, %s1220_s27, %s1221_s18  }
 0x29f   : > { %s449_s28 = scalar_lea.vmem [#allocation9], %s876_s12  ;;  %s710_s4 = sshll.u32 %s706_s26, 4  ;;  %s711_s4 = int_to_ptr.hbm [resolvable:$true] %s710_s4 }
 0x2a0   : > { %s708_s15 = sshll.u32 %s449_s28, 4  ;;  %s691_s17 = scalar_lea.sflag [#allocation4], %s1377_s2  ;;  %s709_s15 = int_to_ptr.vmem [resolvable:$true] %s708_s15 }
 0x2a1   : > { %s1150_s13 = sshra.s32 %s711_s4, 4  ;;  %s1156_s23 = scalar_lea.hbm %s1532_s8, 16  ;;  %s1151_s13 = int_to_ptr.hbm [resolvable:$true] %s1150_s13 }
 0x2a2   : > { %s1152_s29 = scalar_lea.hbm %s1151_s13, 8  ;;  %p1157_p0 = scmp.lt.s32.totalorder %s1151_s13, %s1532_s8 }
 0x2a3   : > { %p1153_p9 = scmp.ne.s32.totalorder %s1151_s13, %s1152_s29  ;;  %p1158_p4 = scmp.lt.s32.totalorder %s1156_s23, %s1152_s29 }
 0x2a5   : > { %p1154_p10 = pnand %p1153_p9, %p1324_p11  ;;  %p1159_p5 = por %p1158_p4, %p1157_p0 }
 0x2a7   : > { %p1155_p1 = pneg %p1154_p10 }
 0x2a9   : > { %p1160_p6 = pnand %p1159_p5, %p1155_p1 }
 0x304   : > { %v675_v7 = vpop.permute.xlu1 %674 }
 0x306   : > { %v670_v5 = vpop.permute.xlu0 %669 }
 0x307   : > { %v672_v6 = vadd.f32 %v670_v5, %v1431_v33 }
 0x309   : > { %v677_v14 = vadd.f32 %v675_v7, %v672_v6 }
 0x30b   : > { %678 = vst.msk [vmem:[%s449_s28] sm:$0xff] %vm484_vm0, %v677_v14 }
 0x30c   : > { %1163 = shalt.err (!%p1160_p6)
}
 0x30d   : > { %946 = dma.vmem_to_hbm [thread:$0]  (%p1324_p11), %s709_s15, 128, %s711_s4, %s691_s17  }
 0x30e PF: > { %s738_s25 = sand.u32 1, %s1198_s30   ;;  %p958_p13 = pnand %p871_p2, %p1328_p12 }
 0x30f   : > { %s739_s20 = scalar_lea.sflag [#allocation4], %s738_s25 }
 0x310   : > { %p959_p3 = pneg %p958_p13 }
 0x312   : > { %1189 = dma.done.wait (%p959_p3), %s739_s20, 128  }
 0x313   : > { %1191 = vsyncadd (%p959_p3), %s739_s20, 4294967168  ;;  %s749_s27 = scalar_lea.sflag [#allocation11], %s738_s25 }
 0x314   : > { %1193 = dma.done.wait (%p959_p3), %s749_s27, 384  }
 0x315   : > { %1195 = vsyncadd (%p959_p3), %s749_s27, 4294966912  ;;  %s1555_s12 = sld [smem:[#allocation18_spill]]  ;;  %s1558_s30 = smov %s1202_s10 }
 0x316   : > { %s1556_s18 = sld [smem:[#allocation16_spill]] }
 0x317   : > { %s1557_s11 = sld [smem:[#allocation19_spill]] }
 0x31b   : > { %p27_p11 = scmp.ge.s32.totalorder %s1555_s12, 4  }
 0x31c   : > { %s1559_s10 = smov %s1556_s18 }
 0x31d   :  { %29 = sbr.rel (!%p27_p11) target bundleno = 11 (0xb), region = 170 }
 0x322   :  { %755 = vsyncpa [#allocation3], 1 }
 0x323   :  { %757 = vsyncpa [#allocation3 + $0x1], 1 }
 0x324   :  { %758 = vsyncpa [#allocation7], 1 }
 0x325   :  { %759 = vsyncpa [#allocation4], 1 }
 0x326   :  { %761 = vsyncpa [#allocation4 + $0x1], 1 }
 0x327   :  { %762 = vsyncpa [#allocation11], 1 }
 0x328   :  { %764 = vsyncpa [#allocation11 + $0x1], 1 }

</bundles_post_ra>
